<compile_context>
chip_gen: v7x
topology: tpu7x:2x2x1
jax: 0.10.0
libtpu: 0.0.40
codegen_flags: <defaults>
</compile_context>

<pallas_src>
import jax
import jax.numpy as jnp
from jax import lax
from jax.experimental import pallas as pl
from jax.experimental.pallas import tpu as pltpu


def _round_up(x: int, m: int) -> int:
    return (x + m - 1) // m * m


# ----------------------------- Pallas kernel ------------------------------- #

def _score_kernel(h_ref, rq_ref, ent_ref, out_ref):
    """One grid step scores the (padded) batch against one entity tile.

    h_ref  : (Bp, D)  f32   head embeddings            (resident across tiles)
    rq_ref : (Bp, D)  f32   relation + qualifier agg   (resident across tiles)
    ent_ref: (D, TN)  bf16  pre-transposed entity-table tile (streamed)
    out_ref: (Bp, TN) f32   score tile (lane-dense along entities)
    """
    # Tiny per-tile VPU work (Bp*D mul + cast), fully hidden under the entity DMA.
    query = (h_ref[...] * rq_ref[...]).astype(jnp.bfloat16)
    # (Bp, D) x (D, TN) -> (Bp, TN); natural MXU layout, f32 accumulation.
    out_ref[...] = lax.dot_general(
        query, ent_ref[...],
        dimension_numbers=(((1,), (0,)), ((), ())),
        preferred_element_type=jnp.float32,
    )


def pallas_score_all_entities(h_emb, rq_emb, ent_table_t_bf16, *, tile_n=512):
    """scores = (h_emb * rq_emb) @ ent_table  with ent_table supplied as (D, N) bf16."""
    B, D = h_emb.shape
    D2, N = ent_table_t_bf16.shape
    assert D == D2

    # Pad batch to a sublane multiple (MXU/VPU layout); pad rows are sliced off.
    Bp = _round_up(max(B, 8), 8)
    if Bp != B:
        pad_b = Bp - B
        h_emb = jnp.pad(h_emb, ((0, pad_b), (0, 0)))
        rq_emb = jnp.pad(rq_emb, ((0, pad_b), (0, 0)))

    # Wide entity tiles (multiple of 128 lanes), clamped to the table width.
    tile_n = min(_round_up(tile_n, 128), _round_up(N, 128))
    Np = _round_up(N, tile_n)
    if Np != N:
        ent_table_t_bf16 = jnp.pad(ent_table_t_bf16, ((0, 0), (0, Np - N)))

    grid = (Np // tile_n,)
    out = pl.pallas_call(
        _score_kernel,
        out_shape=jax.ShapeDtypeStruct((Bp, Np), jnp.float32),
        grid_spec=pltpu.PrefetchScalarGridSpec(
            num_scalar_prefetch=0,
            grid=grid,
            in_specs=[
                pl.BlockSpec((Bp, D), lambda j: (0, 0)),        # h_emb   (resident)
                pl.BlockSpec((Bp, D), lambda j: (0, 0)),        # rq_emb  (resident)
                pl.BlockSpec((D, tile_n), lambda j: (0, j)),    # entity-table tile
            ],
            out_specs=pl.BlockSpec((Bp, tile_n), lambda j: (0, j)),
        ),
        compiler_params=pltpu.CompilerParams(
            # entity-tile axis is independent -> megacore-shardable on v7x
            dimension_semantics=("parallel",),
        ),
    )(h_emb, rq_emb, ent_table_t_bf16)
    return out[:B, :N]


# --------------------------- model (JAX wrapper) ---------------------------- #

class QualifierModelPallas:
    """JAX/Pallas counterpart of QualifierModel's scoring forward pass."""

    def __init__(self, num_entities, num_relations, dim, max_num_qualifier_pairs,
                 seed=0, padding_idx=0):
        self.num_entities = num_entities
        self.num_relations = num_relations
        self.dim = dim
        self.max_num_qualifier_pairs = max_num_qualifier_pairs
        self.padding_idx = padding_idx
        key = jax.random.PRNGKey(seed)
        k_e, k_r = jax.random.split(key)
        # deterministic synthetic parameters (reset_parameters analogue), f32 masters
        self.entity_emb = (jax.random.normal(k_e, (num_entities, dim), jnp.float32)
                           / jnp.sqrt(dim))
        self.relation_emb = (jax.random.normal(k_r, (num_relations, dim), jnp.float32)
                             / jnp.sqrt(dim))
        self._refresh_scoring_table()

    def _refresh_scoring_table(self):
        # post_parameter_update analogue: regenerate the bandwidth-optimized copy of
        # the entity table used for all-entity scoring (pre-transposed, bf16).
        self.entity_emb_t_bf16 = jnp.asarray(self.entity_emb.T, dtype=jnp.bfloat16)

    def forward(self, h_indices, r_indices, t_indices, qualifier_indices):
        """
        h_indices:         (B,)  int32
        r_indices:         (B,)  int32
        t_indices:         unused (score against all entities), kept for parity
        qualifier_indices: (B, 2*Q) int32 — even slots = qualifier relation idx,
                           odd slots = qualifier entity idx; padding_idx marks padding.
        returns:           (B, num_entities) float32 scores
        """
        del t_indices  # scoring against all entities, as in the base contract
        B = h_indices.shape[0]
        Q = self.max_num_qualifier_pairs

        # --- glue: embedding gathers + qualifier aggregation (plain JAX, f32) ---
        h_emb = self.entity_emb[h_indices]                        # (B, D)
        r_emb = self.relation_emb[r_indices]                      # (B, D)

        qual = qualifier_indices.reshape(B, Q, 2)
        qr_idx = qual[..., 0]                                     # (B, Q) relation idx
        qe_idx = qual[..., 1]                                     # (B, Q) entity idx
        qr_emb = self.relation_emb[qr_idx]                        # (B, Q, D)
        qe_emb = self.entity_emb[qe_idx]                          # (B, Q, D)
        # TODO(synk): padding convention — a dedicated padding index may differ in the
        # concrete PyTorch subclass; here padding_idx (default 0) marks unused pairs.
        pad = self.padding_idx
        pad_mask = ((qr_idx != pad) & (qe_idx != pad)).astype(jnp.float32)[..., None]
        q_agg = jnp.sum(qr_emb * qe_emb * pad_mask, axis=1)       # (B, D)

        rq_emb = r_emb + q_agg                                    # precombined: 1 fewer input

        # --- hot path: fused query mul + tiled matmul over the entity table ---
        return pallas_score_all_entities(h_emb, rq_emb, self.entity_emb_t_bf16)

    # convenience wrappers mirroring the torch API
    def score_t(self, hr_batch, qualifiers):
        h, r = hr_batch[:, 0], hr_batch[:, 1]
        return self.forward(h, r, None, qualifiers)


# ----------------------------------- main ----------------------------------- #

if __name__ == "__main__":
    NUM_ENTITIES = 1024     # small, but > tile_n so the entity grid has >= 2 steps
    NUM_RELATIONS = 16
    DIM = 128
    BATCH = 8
    MAX_QUAL_PAIRS = 2

    model = QualifierModelPallas(NUM_ENTITIES, NUM_RELATIONS, DIM, MAX_QUAL_PAIRS, seed=0)

    key = jax.random.PRNGKey(0)
    k_h, k_r, k_q = jax.random.split(key, 3)
    h_idx = jax.random.randint(k_h, (BATCH,), 0, NUM_ENTITIES, jnp.int32)
    r_idx = jax.random.randint(k_r, (BATCH,), 0, NUM_RELATIONS, jnp.int32)
    # qualifier indices; zeros act as padding
    qual_idx = jax.random.randint(k_q, (BATCH, 2 * MAX_QUAL_PAIRS), 0, NUM_RELATIONS, jnp.int32)

    scores = model.forward(h_idx, r_idx, None, qual_idx)
    scores = jax.block_until_ready(scores)

    # reference check (bf16-consistent: same products, f32 accumulation)
    h_emb = model.entity_emb[h_idx]
    r_emb = model.relation_emb[r_idx]
    qual = qual_idx.reshape(BATCH, MAX_QUAL_PAIRS, 2)
    qr, qe = qual[..., 0], qual[..., 1]
    mask = ((qr != 0) & (qe != 0)).astype(jnp.float32)[..., None]
    q_agg = jnp.sum(model.relation_emb[qr] * model.entity_emb[qe] * mask, axis=1)
    query = h_emb * (r_emb + q_agg)
    ref = (query.astype(jnp.bfloat16).astype(jnp.float32)
           @ model.entity_emb_t_bf16.astype(jnp.float32))

    assert scores.shape == (BATCH, NUM_ENTITIES)
    assert jnp.allclose(scores, ref, atol=2e-3, rtol=2e-3), float(jnp.max(jnp.abs(scores - ref)))
    print("KERNEL_OK")
</pallas_src>

<mosaic_0001>
module attributes {stable_mosaic.version = 11 : i64} {
  func.func @_score_kernel(%arg0: i32, %arg1: memref<8x128xf32, #tpu.memory_space<vmem>>, %arg2: memref<8x128xf32, #tpu.memory_space<vmem>>, %arg3: memref<128x512xbf16, #tpu.memory_space<vmem>>, %arg4: memref<8x512xf32, #tpu.memory_space<vmem>>) attributes {dimension_semantics = [#tpu.dimension_semantics<parallel>], iteration_bounds = array<i64: 2>, scalar_prefetch = 0 : i64, scratch_operands = 0 : i64, tpu.core_type = #tpu.core_type<tc>, window_params = [{pipeline_mode = #tpu.pipeline_mode<synchronous>, transform_indices = @transform_0, window_bounds = array<i64: 8, 128>}, {pipeline_mode = #tpu.pipeline_mode<synchronous>, transform_indices = @transform_1, window_bounds = array<i64: 8, 128>}, {transform_indices = @transform_2, window_bounds = array<i64: 128, 512>}, {transform_indices = @transform_3, window_bounds = array<i64: 8, 512>}]} {
    %c0 = arith.constant 0 : index
    %c0_0 = arith.constant 0 : index
    %0 = vector.load %arg1[%c0, %c0_0] : memref<8x128xf32, #tpu.memory_space<vmem>>, vector<8x128xf32>
    %c0_1 = arith.constant 0 : index
    %c0_2 = arith.constant 0 : index
    %1 = vector.load %arg2[%c0_1, %c0_2] : memref<8x128xf32, #tpu.memory_space<vmem>>, vector<8x128xf32>
    %2 = arith.mulf %0, %1 : vector<8x128xf32>
    %3 = arith.truncf %2 : vector<8x128xf32> to vector<8x128xbf16>
    %c0_3 = arith.constant 0 : index
    %c0_4 = arith.constant 0 : index
    %4 = vector.load %arg3[%c0_3, %c0_4] : memref<128x512xbf16, #tpu.memory_space<vmem>>, vector<128x512xbf16>
    %cst = arith.constant dense<0.000000e+00> : vector<8x512xf32>
    %5 = tpu.matmul %3, %4, %cst {dimension_numbers = #tpu.dot_dimension_numbers<[1], [0], [0], [1], [0, 0, 1, 1], [], []>} : vector<8x128xbf16>, vector<128x512xbf16>, vector<8x512xf32> -> vector<8x512xf32>
    %c0_5 = arith.constant 0 : index
    %c0_6 = arith.constant 0 : index
    %6 = vector.load %arg4[%c0_5, %c0_6] : memref<8x512xf32, #tpu.memory_space<vmem>>, vector<8x512xf32>
    tpu.vector_store %arg4[%c0_5, %c0_6], %5 {strides = array<i32>} : memref<8x512xf32, #tpu.memory_space<vmem>>, vector<8x512xf32>,
    return
  }
  func.func @transform_0(%arg0: i32) -> (i32, i32) {
    %c0_i32 = arith.constant 0 : i32
    %c0_i32_0 = arith.constant 0 : i32
    %c0_i32_1 = arith.constant 0 : i32
    return %c0_i32, %c0_i32_0 : i32, i32
  }
  func.func @transform_1(%arg0: i32) -> (i32, i32) {
    %c0_i32 = arith.constant 0 : i32
    %c0_i32_0 = arith.constant 0 : i32
    %c0_i32_1 = arith.constant 0 : i32
    return %c0_i32, %c0_i32_0 : i32, i32
  }
  func.func @transform_2(%arg0: i32) -> (i32, i32) {
    %c0_i32 = arith.constant 0 : i32
    %c0_i32_0 = arith.constant 0 : i32
    return %c0_i32, %arg0 : i32, i32
  }
  func.func @transform_3(%arg0: i32) -> (i32, i32) {
    %c0_i32 = arith.constant 0 : i32
    %c0_i32_0 = arith.constant 0 : i32
    return %c0_i32, %arg0 : i32, i32
  }
}

</mosaic_0001>

<bundles_post_ra>
// kernel: tpu_custom_call.1
= control target key start
LH: loop header
LB: loop body
LE: loop exit
PB: predicated region body
PF: predicated region fallthrough
CT: control target
= control target key end

     0   :  { %8 = vsyncpa [#allocation3], 0  ;;  %s1231_s0 = inlined_call_operand.hbm [shape: f32[8,128], index: 0, kind: input, shape index: {}]   ;;  %s1232_s1 = inlined_call_operand.hbm [shape: f32[8,128], index: 1, kind: input, shape index: {}]   ;;  %s1233_s2 = inlined_call_operand.hbm [shape: bf16[128,1024], index: 2, kind: input, shape index: {}]   ;;  %s1234_s3 = inlined_call_operand.hbm [shape: f32[8,1024], index: 3, kind: output, shape index: {}]  }
   0x1   :  { %9 = vsyncpa [#allocation6], 0 }
   0x2   :  { %10 = vsyncpa [#allocation4], 0 }
   0x3   :  { %12 = vsyncpa [#allocation4 + $0x1], 0  ;;  %s962_s12 = smov 0   ;;  %s964_s13 = smov 0  }
   0x4   :  { %s966_s14 = smov 0   ;;  %s968_s15 = smov 0  }
   0x5 LB: > { %s983_s16 = sadd.s32 4294967295, %s932_s15   ;;  %s601_s17 = sadd.s32 4294967294, %s932_s15   ;;  %s932_s15 = sphi %s968_s15, %s1261_s15   ;;  %s928_s14 = sphi %s966_s14, %s1260_s14   ;;  %s924_s13 = sphi %s964_s13, %s1259_s13   ;;  %s920_s12 = sphi %s962_s12, %s1258_s12  }
   0x6   : > { %s987_s18 = sadd.s32 1, %s932_s15   ;;  %s67_s19 = sadd.s32 1, %s928_s14 }
   0x7   : > { %s64_s20 = ssub.s32 %s932_s15, %s987_s18  ;;  %p74_p0 = scmp.ne.s32.totalorder %s928_s14, %s924_s13 }
   0x8   : > { %p65_p1 = scmp.eq.s32.totalorder %s64_s20, 0  ;;  %p75_p2 = scmp.eq.s32.totalorder %s932_s15, 0 }
   0x9   : > { %p80_p3 = scmp.ne.s32.totalorder %s924_s13, %s920_s12  ;;  %p1235_p4 = scmp.eq.s32.totalorder %s983_s16, 0 }
   0xa   : > { %s999_s21 = scalar_select %p65_p1, %s928_s14, %s67_s19  }
   0xb   : > { %p1001_p5 = por %p75_p2, %p74_p0  ;;  %p1007_p6 = por %p1235_p4, %p80_p3 }
   0xc   : > { %p104_p7 = scmp.eq.s32.totalorder %s983_s16, 1  ;;  %p110_p8 = scmp.eq.s32.totalorder %s601_s17, 1 }
   0xd   : > { %s1241_s23 = scalar_select %p1007_p6, 1, 0 }
   0xe   : > { %p602_p9 = scmp.ge.s32.totalorder %s932_s15, 1  ;;  %p117_p10 = scmp.lt.s32.totalorder %s932_s15, 3 }
   0xf   : > { %p1014_p11 = por %p104_p7, %p74_p0  ;;  %p1018_p12 = por %p110_p8, %p80_p3 }
  0x10   : > { %p1022_p13 = pnand %p602_p9, %p117_p10  ;;  %s934_s27 = smov [#allocation2]  }
  0x11   : > { %s1242_s24 = scalar_select %p1014_p11, 1, 0 }
  0x12   : > { %s1243_s25 = scalar_select %p1018_p12, 1, 0 }
  0x13   : > { %s1244_s26 = scalar_select %p1022_p13, 1, 0 }
  0x14   : > { %p665_p2 = pneg %p1022_p13  ;;  %s130_s28 = sshll.u32 %s934_s27, 4  ;;  %s131_s28 = int_to_ptr.vmem [resolvable:$true] %s130_s28 }
  0x15   : > { %p682_p4 = scmp.lt.s32.totalorder %s932_s15, 2  ;;  %p1245_p0 = scmp.eq.s32.totalorder %s983_s16, 0 }
  0x16   : > { %s935_s4 = smov [#allocation5]   ;;  %s772_s8 = scalar_lea.hbm %s1231_s0, 128 }
  0x17   : > { %p1032_p7 = pnand %p665_p2, %p1245_p0  ;;  %p1038_p3 = pnand %p682_p4, %p1001_p5 }
  0x18   : > { %s141_s5 = sshll.u32 %s935_s4, 4  ;;  %p773_p8 = scmp.ne.s32.totalorder %s1231_s0, %s772_s8  ;;  %s1042_s5 = int_to_ptr.vmem [resolvable:$true] %s141_s5 }
  0x19   : > { %s1247_s30 = scalar_select %p1038_p3, 1, 0 }
  0x1a   : > { %p774_p9 = pneg %p1032_p7  ;;  %p779_p10 = scmp.lt.u32.totalorder %s772_s8, %s1231_s0 }
  0x1c   : > { %p775_p4 = pnand %p774_p9, %p773_p8 }
  0x1e   : > { %p776_p5 = pneg %p775_p4 }
  0x20   : > { %p781_p2 = pnand %p779_p10, %p776_p5 }
  0x22   : > { %784 = shalt.err (!%p781_p2)
}
  0x23   : > { %s785_s19 = scalar_lea.vmem %s131_s28, 128  ;;  %p793_p11 = scmp.lt.s32.totalorder %s131_s28, %s131_s28 }
  0x24   : > { %p786_p0 = scmp.ne.s32.totalorder %s131_s28, %s785_s19  ;;  %p794_p6 = scmp.lt.s32.totalorder %s785_s19, %s785_s19 }
  0x26   : > { %p788_p1 = pnand %p786_p0, %p774_p9  ;;  %p795_p13 = por %p794_p6, %p793_p11 }
  0x28   : > { %p789_p12 = pneg %p788_p1 }
  0x2a   : > { %p796_p3 = pnand %p795_p13, %p789_p12 }
  0x2c   : > { %799 = shalt.err (!%p796_p3)
}
  0x2d   : > { %668 = dma.hbm_to_vmem [thread:$0]  (!%p1032_p7), %s1231_s0, 128, %s131_s28, [#allocation3]  }
  0x2e   : > { %s152_s27 = sand.u32 1, %s932_s15   ;;  %s800_s7 = scalar_lea.hbm %s1232_s1, 128 }
  0x2f   : > { %p801_p1 = scmp.ne.s32.totalorder %s1232_s1, %s800_s7  ;;  %p807_p12 = scmp.lt.u32.totalorder %s800_s7, %s1232_s1 }
  0x31   : > { %p803_p6 = pnand %p801_p1, %p774_p9 }
  0x33   : > { %p804_p11 = pneg %p803_p6 }
  0x35   : > { %p809_p13 = pnand %p807_p12, %p804_p11 }
  0x37   : > { %812 = shalt.err (!%p809_p13)
}
  0x38   : > { %s813_s28 = scalar_lea.vmem %s1042_s5, 128  ;;  %p821_p5 = scmp.lt.s32.totalorder %s1042_s5, %s1042_s5 }
  0x39   : > { %p814_p3 = scmp.ne.s32.totalorder %s1042_s5, %s813_s28  ;;  %p822_p10 = scmp.lt.s32.totalorder %s813_s28, %s813_s28 }
  0x3b   : > { %p816_p8 = pnand %p814_p3, %p774_p9  ;;  %p823_p2 = por %p822_p10, %p821_p5 }
  0x3d   : > { %p817_p4 = pneg %p816_p8 }
  0x3f   : > { %p824_p0 = pnand %p823_p2, %p817_p4 }
  0x41   : > { %827 = shalt.err (!%p824_p0)
}
  0x42   : > { %671 = dma.hbm_to_vmem [thread:$0]  (!%p1032_p7), %s1232_s1, 128, %s1042_s5, [#allocation6]  }
  0x43   : > { %s154_s20 = sand.u32 1, %s928_s14   ;;  %s651_s4 = sshll.u32 %s932_s15, 8 }
  0x44   : > { %s606_s22 = sshll.u32 %s154_s20, 8  ;;  %s1097_s8 = scalar_lea.hbm %s1233_s2, %s651_s4 }
  0x45   : > { %s156_s29 = scalar_lea.vmem [#allocation7], %s606_s22  ;;  %s1101_s10 = scalar_lea.sflag [#allocation3], %s152_s27 }
  0x46   : > { %s163_s9 = sshll.u32 %s156_s29, 4  ;;  %s828_s11 = scalar_lea.hbm %s1097_s8, 4096  ;;  %s1099_s9 = int_to_ptr.vmem [resolvable:$true] %s163_s9 }
  0x47   : > { %p829_p7 = scmp.ne.s32.totalorder %s1097_s8, %s828_s11  ;;  %p1248_p9 = scmp.ne.s32.totalorder %s1247_s30, 0 }
  0x48   : > { %s833_s17 = scalar_lea.hbm %s1233_s2, 8192  ;;  %p834_p12 = scmp.lt.u32.totalorder %s1097_s8, %s1233_s2 }
  0x49   : > { %p830_p1 = pneg %p1248_p9  ;;  %p835_p13 = scmp.lt.u32.totalorder %s833_s17, %s828_s11 }
  0x4a   : > { %p837_p8 = scmp.lt.u32.totalorder %s828_s11, %s1097_s8 }
  0x4b   : > { %p831_p6 = pnand %p830_p1, %p829_p7  ;;  %p836_p3 = por %p835_p13, %p834_p12 }
  0x4d   : > { %p832_p11 = pneg %p831_p6  ;;  %p838_p4 = por %p837_p8, %p836_p3 }
  0x4f   : > { %p839_p5 = pnand %p838_p4, %p832_p11 }
  0x51   : > { %842 = shalt.err (!%p839_p5)
}
  0x52   : > { %s843_s27 = scalar_lea.vmem %s1099_s9, 4096  ;;  %s936_s22 = smov [#allocation7]  }
  0x53   : > { %p844_p10 = scmp.ne.s32.totalorder %s1099_s9, %s843_s27  ;;  %s848_s4 = sshll.u32 %s936_s22, 4  ;;  %s849_s4 = int_to_ptr.vmem [resolvable:$false] %s848_s4 }
  0x54   : > { %s850_s6 = scalar_lea.vmem %s849_s4, 8192  ;;  %p851_p7 = scmp.lt.s32.totalorder %s1099_s9, %s849_s4 }
  0x55   : > { %p846_p2 = pnand %p844_p10, %p830_p1  ;;  %p852_p6 = scmp.lt.s32.totalorder %s850_s6, %s843_s27 }
  0x57   : > { %p847_p0 = pneg %p846_p2  ;;  %p853_p12 = por %p852_p6, %p851_p7 }
  0x59   : > { %p854_p13 = pnand %p853_p12, %p847_p0 }
  0x5b   : > { %857 = shalt.err (!%p854_p13)
}
  0x5c   : > { %s937_s7 = smov 512   ;;  %s938_s29 = smov 256  }
  0x5d   : > { %s939_s11 = smov 16   ;;  %p1249_p1 = scmp.ne.s32.totalorder %s1244_s26, 0 }
  0x5e   : > { %675 = dma.hbm_to_vmem [thread:$0]  (!%p1248_p9), %s1097_s8, 4096, %s1099_s9, %s1101_s10, %s937_s7, %s938_s29, %s939_s11  }
  0x5f   : > { %175 = sbr.rel (%p1249_p1) target bundleno = 374 (0x176), region = 32  ;;  %p1250_p11 = scmp.eq.s32.totalorder (!%p1249_p1), %s983_s16, 0 }
  0x66   : > { %903 = dma.done.wait (%p1250_p11), [#allocation3], 128   ;;  %p1251_p3 = pmov %p1250_p11 }
  0x68   : > { %905 = vsyncadd (%p1251_p3), [#allocation3], 4294967168  ;;  %p1252_p8 = pmov %p1251_p3 }
  0x69   : > { %p1253_p4 = pmov %p1251_p3 }
  0x6a   : > { %907 = dma.done.wait (%p1252_p8), [#allocation6], 128  }
  0x6b   : > { %909 = vsyncadd (%p1253_p4), [#allocation6], 4294967168  ;;  %s185_s30 = sand.u32 1, %s983_s16   ;;  %s1141_s8 = sand.u32 1, %s924_s13  }
  0x6c   : > { %s612_s26 = sshll.u32 %s1141_s8, 8  ;;  %s186_s9 = scalar_lea.sflag [#allocation3], %s185_s30 }
  0x6d   : > { %s1144_s10 = scalar_lea.vmem [#allocation7], %s612_s26  ;;  %p1254_p9 = scmp.ne.s32.totalorder %s1241_s23, 0 }
  0x6f   : > { %911 = dma.done.wait (%p1254_p9), %s186_s9, 4096  }
  0x70   : > { %913 = vsyncadd (%p1254_p9), %s186_s9, 4294963200  ;;  %v940_v0 = vmov 0   ;;  %v724_v1 = vld [vmem:[%s1144_s10 + $0x4] ss:$16 sps:$4 sm:$0xff]   ;;  %v726_v2 = vld [vmem:[%s1144_s10 + $0xc] ss:$16 sps:$4 sm:$0xff]  }
  0x71   : > { %443 = vmatprep.mubr.bf16.mxu0 %v940_v0  ;;  %484 = vmatprep.mubr.bf16.mxu1 %v940_v0  ;;  %v728_v3 = vld [vmem:[%s1144_s10] ss:$16 sps:$4 sm:$0xff]   ;;  %v729_v4 = vld [vmem:[%s1144_s10 + $0x8] ss:$16 sps:$4 sm:$0xff]   ;;  %v730_v5 = vld [vmem:[%s1144_s10 + $0x24] ss:$16 sps:$4 sm:$0xff]  }
  0x72   : > { %411 = vmatprep.subr.bf16.mxu0 %v724_v1  ;;  %452 = vmatprep.subr.bf16.mxu1 %v726_v2  ;;  %v732_v6 = vld [vmem:[%s1144_s10 + $0x2c] ss:$16 sps:$4 sm:$0xff]   ;;  %v734_v7 = vld [vmem:[%s1144_s10 + $0x20] ss:$16 sps:$4 sm:$0xff]   ;;  %v735_v8 = vld [vmem:[%s1144_s10 + $0x28] ss:$16 sps:$4 sm:$0xff]  }
  0x73   : > { %412 = vmatpush1.bf16.msra.mxu0 %v728_v3  ;;  %453 = vmatpush1.bf16.msra.mxu1 %v729_v4  ;;  %v736_v9 = vld [vmem:[%s1144_s10 + $0x44] ss:$16 sps:$4 sm:$0xff]   ;;  %v738_v10 = vld [vmem:[%s1144_s10 + $0x4c] ss:$16 sps:$4 sm:$0xff]   ;;  %v740_v11 = vld [vmem:[%s1144_s10 + $0x40] ss:$16 sps:$4 sm:$0xff]  }
  0x74   : > { %413 = vmatprep.subr.bf16.mxu0 %v730_v5  ;;  %454 = vmatprep.subr.bf16.mxu1 %v732_v6  ;;  %v741_v12 = vld [vmem:[%s1144_s10 + $0x48] ss:$16 sps:$4 sm:$0xff]   ;;  %v742_v13 = vld [vmem:[%s1144_s10 + $0x64] ss:$16 sps:$4 sm:$0xff]   ;;  %v744_v14 = vld [vmem:[%s1144_s10 + $0x6c] ss:$16 sps:$4 sm:$0xff]  }
  0x75   : > { %v746_v15 = vld [vmem:[%s1144_s10 + $0x60] ss:$16 sps:$4 sm:$0xff]   ;;  %v747_v16 = vld [vmem:[%s1144_s10 + $0x68] ss:$16 sps:$4 sm:$0xff]   ;;  %v748_v17 = vld [vmem:[%s1144_s10 + $0x84] ss:$16 sps:$4 sm:$0xff]  }
  0x76   : > { %v750_v18 = vld [vmem:[%s1144_s10 + $0x8c] ss:$16 sps:$4 sm:$0xff]   ;;  %v752_v19 = vld [vmem:[%s1144_s10 + $0x80] ss:$16 sps:$4 sm:$0xff]   ;;  %v753_v20 = vld [vmem:[%s1144_s10 + $0x88] ss:$16 sps:$4 sm:$0xff]  }
  0x77   : > { %414 = vmatpush1.bf16.msra.mxu0 %v734_v7  ;;  %455 = vmatpush1.bf16.msra.mxu1 %v735_v8  ;;  %v754_v21 = vld [vmem:[%s1144_s10 + $0xa4] ss:$16 sps:$4 sm:$0xff]   ;;  %v756_v22 = vld [vmem:[%s1144_s10 + $0xac] ss:$16 sps:$4 sm:$0xff]   ;;  %v758_v23 = vld [vmem:[%s1144_s10 + $0xa0] ss:$16 sps:$4 sm:$0xff]  }
  0x78   : > { %415 = vmatprep.subr.bf16.mxu0 %v736_v9  ;;  %456 = vmatprep.subr.bf16.mxu1 %v738_v10  ;;  %v759_v24 = vld [vmem:[%s1144_s10 + $0xa8] ss:$16 sps:$4 sm:$0xff]   ;;  %v760_v25 = vld [vmem:[%s1144_s10 + $0xc4] ss:$16 sps:$4 sm:$0xff]   ;;  %v762_v26 = vld [vmem:[%s1144_s10 + $0xcc] ss:$16 sps:$4 sm:$0xff]  }
  0x79   : > { %v764_v27 = vld [vmem:[%s1144_s10 + $0xc0] ss:$16 sps:$4 sm:$0xff]   ;;  %v765_v28 = vld [vmem:[%s1144_s10 + $0xc8] ss:$16 sps:$4 sm:$0xff]   ;;  %v766_v31 = vld [vmem:[%s1144_s10 + $0xe4] ss:$16 sps:$4 sm:$0xff]  }
  0x7a   : > { %v215_v29 = vld [vmem:[#allocation2] sm:$0xff]  ;;  %v216_v30 = vld [vmem:[#allocation5] sm:$0xff]  ;;  %s613_s23 = sshll.u32 %s1141_s8, 5  ;;  %s652_s17 = sshll.u32 %s983_s16, 9 }
  0x7b   : > { %416 = vmatpush1.bf16.msra.mxu0 %v740_v11  ;;  %457 = vmatpush1.bf16.msra.mxu1 %v741_v12  ;;  %v768_v32 = vld [vmem:[%s1144_s10 + $0xec] ss:$16 sps:$4 sm:$0xff]   ;;  %v217_v33 = vmul.f32 %v216_v30, %v215_v29  ;;  %v770_v34 = vld [vmem:[%s1144_s10 + $0xe0] ss:$16 sps:$4 sm:$0xff]   ;;  %v771_v35 = vld [vmem:[%s1144_s10 + $0xe8] ss:$16 sps:$4 sm:$0xff]   ;;  %s1189_s27 = scalar_lea.hbm %s1234_s3, %s652_s17 }
  0x7c   : > { %417 = vmatprep.subr.bf16.mxu0 %v742_v13  ;;  %458 = vmatprep.subr.bf16.mxu1 %v744_v14  ;;  %s211_s5 = scalar_lea.vmem [#allocation8], %s613_s23  ;;  %s498_s16 = scalar_lea.sflag [#allocation4], %s1141_s8 }
  0x7d   : > { %v218_v36 = vpack.c.bf16 %v217_v33, %v217_v33  ;;  %s512_s28 = sshll.u32 %s211_s5, 4  ;;  %p1255_p10 = scmp.ne.s32.totalorder %s1242_s24, 0  ;;  %s1184_s28 = int_to_ptr.vmem [resolvable:$true] %s512_s28 }
  0x7e   : > { %s858_s22 = scalar_lea.vmem %s1184_s28, 512  ;;  %s941_s4 = smov [#allocation8]  }
  0x7f   : > { %418 = vmatpush1.bf16.msra.mxu0 %v746_v15  ;;  %459 = vmatpush1.bf16.msra.mxu1 %v747_v16  ;;  %p859_p5 = scmp.ne.s32.totalorder %s1184_s28, %s858_s22  ;;  %s862_s6 = sshll.u32 %s941_s4, 4  ;;  %s863_s6 = int_to_ptr.vmem [resolvable:$false] %s862_s6 }
  0x80   : > { %419 = vmatprep.subr.bf16.mxu0 %v748_v17  ;;  %460 = vmatprep.subr.bf16.mxu1 %v750_v18  ;;  %s864_s7 = scalar_lea.vmem %s863_s6, 1024  ;;  %p865_p7 = scmp.lt.s32.totalorder %s1184_s28, %s863_s6 }
  0x81   : > { %p860_p2 = pnand %p859_p5, %p1255_p10  ;;  %p866_p6 = scmp.lt.s32.totalorder %s864_s7, %s858_s22 }
  0x83   : > { %420 = vmatpush1.bf16.msra.mxu0 %v752_v19  ;;  %461 = vmatpush1.bf16.msra.mxu1 %v753_v20  ;;  %p861_p0 = pneg %p860_p2  ;;  %p867_p12 = por %p866_p6, %p865_p7 }
  0x84   : > { %421 = vmatprep.subr.bf16.mxu0 %v754_v21  ;;  %462 = vmatprep.subr.bf16.mxu1 %v756_v22 }
  0x85   : > { %p868_p13 = pnand %p867_p12, %p861_p0 }
  0x87   : > { %422 = vmatpush1.bf16.msra.mxu0 %v758_v23  ;;  %463 = vmatpush1.bf16.msra.mxu1 %v759_v24 }
  0x88   : > { %423 = vmatprep.subr.bf16.mxu0 %v760_v25  ;;  %464 = vmatprep.subr.bf16.mxu1 %v762_v26 }
  0x8b   : > { %424 = vmatpush1.bf16.msra.mxu0 %v764_v27  ;;  %465 = vmatpush1.bf16.msra.mxu1 %v765_v28 }
  0x8c   : > { %425 = vmatprep.subr.bf16.mxu0 %v766_v31  ;;  %466 = vmatprep.subr.bf16.mxu1 %v768_v32 }
  0x8f   : > { %426 = vmatpush1.bf16.msra.mxu0 %v770_v34  ;;  %467 = vmatpush1.bf16.msra.mxu1 %v771_v35 }
  0x92   : > { %444 = vmatmul.mubr.bf16.vlgmr.msra.gmra.mrb[0].mxu0 %v218_v36  ;;  %485 = vmatmul.mubr.bf16.vlgmr.msra.gmra.mrb[0].mxu1 %v218_v36 }
 0x165   : > { %v445_v37 = vpop.f32.mrb[0].mxu0  ;;  %v486_v38 = vpop.f32.mrb[0].mxu1 }
 0x166   : > { %493 = vst [vmem:[%s211_s5] sm:$0xff] %v445_v37  ;;  %495 = vst [vmem:[%s211_s5 + $0x10] sm:$0xff] %v486_v38  ;;  %v447_v39 = vpop.f32.mrb[1].mxu0  ;;  %v488_v40 = vpop.f32.mrb[1].mxu1 }
 0x167   : > { %494 = vst [vmem:[%s211_s5 + $0x8] sm:$0xff] %v447_v39  ;;  %496 = vst [vmem:[%s211_s5 + $0x18] sm:$0xff] %v488_v40  ;;  %v449_v41 = vpop.f32.mrb[2].mxu0  ;;  %v490_v42 = vpop.f32.mrb[2].mxu1 }
 0x168   : > { %v450_v43 = vpop.f32.mrb[3].mxu0  ;;  %v491_v44 = vpop.f32.mrb[3].mxu1 }
 0x169   : > { %871 = shalt.err (!%p868_p13)
}
 0x16a   : > { %s872_s29 = scalar_lea.hbm %s1189_s27, 512  ;;  %s876_s8 = scalar_lea.hbm %s1234_s3, 1024 }
 0x16b   : > { %p873_p1 = scmp.ne.s32.totalorder %s1189_s27, %s872_s29  ;;  %p877_p8 = scmp.lt.u32.totalorder %s1189_s27, %s1234_s3 }
 0x16c   : > { %p878_p4 = scmp.lt.u32.totalorder %s876_s8, %s872_s29  ;;  %p880_p5 = scmp.lt.u32.totalorder %s872_s29, %s1189_s27 }
 0x16d   : > { %p874_p11 = pnand %p873_p1, %p1255_p10 }
 0x16e   : > { %p879_p9 = por %p878_p4, %p877_p8 }
 0x16f   : > { %p875_p3 = pneg %p874_p11 }
 0x170   : > { %p881_p2 = por %p880_p5, %p879_p9 }
 0x172   : > { %p882_p0 = pnand %p881_p2, %p875_p3 }
 0x174   : > { %885 = shalt.err (!%p882_p0)
}
 0x175   : > { %663 = dma.vmem_to_hbm [thread:$0]  (%p1255_p10), %s1184_s28, 512, %s1189_s27, %s498_s16  }
 0x176 PF: > { %s524_s10 = sand.u32 1, %s920_s12   ;;  %p1256_p7 = scmp.ne.s32.totalorder %s1243_s25, 0 }
 0x177   : > { %p1257_p6 = scmp.ge.s32.totalorder %s932_s15, 2  ;;  %s525_s23 = scalar_lea.sflag [#allocation4], %s524_s10 }
 0x179   : > { %p677_p12 = pnand %p1257_p6, %p1256_p7 }
 0x17b   : > { %915 = dma.done.wait (!%p677_p12), %s525_s23, 512  }
 0x17c   : > { %917 = vsyncadd (!%p677_p12), %s525_s23, 4294966784  ;;  %p15_p13 = scmp.ge.s32.totalorder %s987_s18, 4   ;;  %s1258_s12 = smov %s924_s13 }
 0x17d   : > { %s1259_s13 = smov %s928_s14  ;;  %s1260_s14 = smov %s999_s21 }
 0x17e   : > { %s1261_s15 = smov %s987_s18  ;;  %17 = sbr.rel (!%p15_p13) target bundleno = 5 (0x5), region = 84 }
 0x185   :  { %530 = vsyncpa [#allocation3], 1 }
 0x186   :  { %532 = vsyncpa [#allocation3 + $0x1], 1 }
 0x187   :  { %533 = vsyncpa [#allocation6], 1 }
 0x188   :  { %534 = vsyncpa [#allocation4], 1 }
 0x189   :  { %536 = vsyncpa [#allocation4 + $0x1], 1 }

</bundles_post_ra>
